<compile_context>
chip_gen: v6e
topology: v6e:2x2x1
jax: 0.10.0
libtpu: 0.0.40
codegen_flags: <defaults>
</compile_context>

<pallas_src>
import functools

import jax
import jax.numpy as jnp
from jax.experimental import pallas as pl
from jax.experimental.pallas import tpu as pltpu


def _round_up(x, m):
    return (x + m - 1) // m * m


def _silu(x):
    return x * jax.nn.sigmoid(x)


def _vae_kernel(x_ref, eps_ref, w_ref, b_ref, out_ref, *,
                input_dim, hidden_dim, latent_dim, out_width):
    f32 = jnp.float32
    compute_dtype = w_ref.dtype  # bf16 if weights packed as bf16, else f32

    def linear(h, layer, din, dout):
        # static slices of the resident packed weight / bias buffers
        w = w_ref[layer, :din, :dout]
        b = b_ref[layer:layer + 1, :dout].astype(f32)
        return jnp.dot(h.astype(compute_dtype), w,
                       preferred_element_type=f32) + b

    x = x_ref[...].astype(f32)

    # ---------------- encoder ----------------
    h = _silu(linear(x, 0, input_dim, hidden_dim))
    h = _silu(linear(h, 1, hidden_dim, 2 * hidden_dim))
    h = _silu(linear(h, 2, 2 * hidden_dim, hidden_dim))
    ml = linear(h, 3, hidden_dim, 2 * latent_dim)     # single merged mean|logvar dot
    mean_raw = ml[:, :latent_dim]
    logvar = ml[:, latent_dim:]

    # LayerNorm(latent_dim, elementwise_affine=False), eps=1e-5 (PyTorch default), f32
    mu = jnp.mean(mean_raw, axis=-1, keepdims=True)
    centered = mean_raw - mu
    var = jnp.mean(centered * centered, axis=-1, keepdims=True)
    mean = centered * jax.lax.rsqrt(var + 1e-5)

    # torch.clamp(logvar, max=4)  (forward returns the clamped logvar)
    logvar = jnp.minimum(logvar, 4.0)

    # ---------------- reparameterize ----------------
    std = jnp.exp(0.5 * logvar)
    z = mean + eps_ref[...].astype(f32) * std

    # ---------------- decoder ----------------
    d = _silu(linear(z, 4, latent_dim, hidden_dim))
    d = _silu(linear(d, 5, hidden_dim, 2 * hidden_dim))
    d = _silu(linear(d, 6, 2 * hidden_dim, hidden_dim))
    recon = linear(d, 7, hidden_dim, input_dim)

    # ---------------- single lane-dense packed output store ----------------
    packed = jnp.concatenate([recon, z, mean, logvar], axis=-1)
    pad = out_width - packed.shape[-1]
    if pad > 0:
        packed = jnp.concatenate(
            [packed, jnp.zeros((packed.shape[0], pad), f32)], axis=-1)
    out_ref[...] = packed


def make_params(key, input_dim, hidden_dim, latent_dim):
    """Deterministic synthetic parameters (weights stored as [in, out])."""
    dims = [
        (input_dim, hidden_dim), (hidden_dim, 2 * hidden_dim),        # encoder
        (2 * hidden_dim, hidden_dim), (hidden_dim, 2 * latent_dim),
        (latent_dim, hidden_dim), (hidden_dim, 2 * hidden_dim),       # decoder
        (2 * hidden_dim, hidden_dim), (hidden_dim, input_dim),
    ]
    params = []
    keys = jax.random.split(key, 2 * len(dims))
    for i, (din, dout) in enumerate(dims):
        w = 0.1 * jax.random.normal(keys[2 * i], (din, dout), jnp.float32)
        b = 0.1 * jax.random.normal(keys[2 * i + 1], (dout,), jnp.float32)
        params.append((w, b))
    return params


def pack_params(params, weight_dtype=jnp.float32):
    """Pack all layer weights/biases into two zero-padded VMEM-friendly buffers.

    On v6e/v7x pass weight_dtype=jnp.bfloat16 to halve weight DMA bytes
    (accumulation in the kernel stays f32).  Keep f32 for exact parity.
    """
    n = len(params)
    din_p = _round_up(max(w.shape[0] for w, _ in params), 8)      # sublane pad
    dout_p = _round_up(max(w.shape[1] for w, _ in params), 128)   # lane pad
    w_packed = jnp.zeros((n, din_p, dout_p), weight_dtype)
    b_packed = jnp.zeros((n, dout_p), jnp.float32)
    for i, (w, b) in enumerate(params):
        w_packed = w_packed.at[i, :w.shape[0], :w.shape[1]].set(
            w.astype(weight_dtype))
        b_packed = b_packed.at[i, :b.shape[0]].set(b)
    return w_packed, b_packed


def vae_forward(x, eps, w_packed, b_packed,
                input_dim, hidden_dim, latent_dim, *, tile_b=128):
    B = x.shape[0]
    TILE_B = _round_up(min(B, tile_b), 8)
    B_pad = _round_up(B, TILE_B)
    if B_pad != B:
        x = jnp.pad(x, ((0, B_pad - B), (0, 0)))
        eps = jnp.pad(eps, ((0, B_pad - B), (0, 0)))

    out_width = _round_up(input_dim + 3 * latent_dim, 128)
    n_layers, din_p, dout_p = w_packed.shape

    kernel = functools.partial(
        _vae_kernel, input_dim=input_dim, hidden_dim=hidden_dim,
        latent_dim=latent_dim, out_width=out_width)

    out = pl.pallas_call(
        kernel,
        out_shape=jax.ShapeDtypeStruct((B_pad, out_width), jnp.float32),
        grid=(B_pad // TILE_B,),
        in_specs=[
            pl.BlockSpec((TILE_B, input_dim), lambda b: (b, 0)),       # x tile
            pl.BlockSpec((TILE_B, latent_dim), lambda b: (b, 0)),      # eps tile
            pl.BlockSpec((n_layers, din_p, dout_p), lambda b: (0, 0, 0)),  # weights (resident)
            pl.BlockSpec((n_layers, dout_p), lambda b: (0, 0)),            # biases (resident)
        ],
        out_specs=pl.BlockSpec((TILE_B, out_width), lambda b: (b, 0)),
        compiler_params=pltpu.CompilerParams(
            # batch axis is parallel -> megacore/2-TC sharding on v7x,
            # harmless on v5e/v6e.
            dimension_semantics=("parallel",),
        ),
    )(x, eps, w_packed, b_packed)

    recon = out[:B, :input_dim]
    z = out[:B, input_dim:input_dim + latent_dim]
    mean = out[:B, input_dim + latent_dim:input_dim + 2 * latent_dim]
    logvar = out[:B, input_dim + 2 * latent_dim:input_dim + 3 * latent_dim]
    return recon, z, mean, logvar


if __name__ == "__main__":
    input_dim, hidden_dim, latent_dim = 16, 32, 8
    batch = 8

    key = jax.random.PRNGKey(0)
    kx, keps, kp = jax.random.split(key, 3)
    x = jax.random.normal(kx, (batch, input_dim), jnp.float32)
    # reparameterization noise (torch.randn_like equivalent, supplied explicitly)
    eps = jax.random.normal(keps, (batch, latent_dim), jnp.float32)
    params = make_params(kp, input_dim, hidden_dim, latent_dim)

    # f32 weights keep exact parity with the PyTorch module; on v6e/v7x use
    # weight_dtype=jnp.bfloat16 to halve weight DMA and double MXU throughput.
    w_packed, b_packed = pack_params(params, weight_dtype=jnp.float32)

    recon, z, mean, logvar = vae_forward(
        x, eps, w_packed, b_packed, input_dim, hidden_dim, latent_dim)
    jax.block_until_ready((recon, z, mean, logvar))

    # quick sanity checks on shapes
    assert recon.shape == (batch, input_dim)
    assert z.shape == mean.shape == logvar.shape == (batch, latent_dim)
    print("KERNEL_OK")
</pallas_src>

<mosaic_0001>
module attributes {stable_mosaic.version = 11 : i64} {
  func.func @_vae_kernel(%arg0: i32, %arg1: memref<8x16xf32, #tpu.memory_space<vmem>>, %arg2: memref<8x8xf32, #tpu.memory_space<vmem>>, %arg3: memref<8x64x128xf32, #tpu.memory_space<vmem>>, %arg4: memref<8x128xf32, #tpu.memory_space<vmem>>, %arg5: memref<8x128xf32, #tpu.memory_space<vmem>>) attributes {dimension_semantics = [#tpu.dimension_semantics<parallel>], iteration_bounds = array<i64: 1>, scalar_prefetch = 0 : i64, scratch_operands = 0 : i64, tpu.core_type = #tpu.core_type<tc>, window_params = [{transform_indices = @transform_0, window_bounds = array<i64: 8, 16>}, {transform_indices = @transform_1, window_bounds = array<i64: 8, 8>}, {pipeline_mode = #tpu.pipeline_mode<synchronous>, transform_indices = @transform_2, window_bounds = array<i64: 8, 64, 128>}, {pipeline_mode = #tpu.pipeline_mode<synchronous>, transform_indices = @transform_3, window_bounds = array<i64: 8, 128>}, {transform_indices = @transform_4, window_bounds = array<i64: 8, 128>}]} {
    %c0 = arith.constant 0 : index
    %c0_0 = arith.constant 0 : index
    %0 = vector.load %arg1[%c0, %c0_0] : memref<8x16xf32, #tpu.memory_space<vmem>>, vector<8x16xf32>
    %c0_1 = arith.constant 0 : index
    %c0_2 = arith.constant 0 : index
    %c0_3 = arith.constant 0 : index
    %1 = vector.load %arg3[%c0_1, %c0_2, %c0_3] : memref<8x64x128xf32, #tpu.memory_space<vmem>>, vector<1x16x32xf32>
    %2 = vector.shape_cast %1 : vector<1x16x32xf32> to vector<16x32xf32>
    %c0_4 = arith.constant 0 : index
    %c0_5 = arith.constant 0 : index
    %3 = vector.load %arg4[%c0_4, %c0_5] : memref<8x128xf32, #tpu.memory_space<vmem>>, vector<1x32xf32>
    %cst = arith.constant dense<0.000000e+00> : vector<8x32xf32>
    %4 = tpu.matmul %0, %2, %cst {dimension_numbers = #tpu.dot_dimension_numbers<[1], [0], [0], [1], [0, 0, 1, 1], [], []>} : vector<8x16xf32>, vector<16x32xf32>, vector<8x32xf32> -> vector<8x32xf32>
    %5 = vector.broadcast %3 : vector<1x32xf32> to vector<8x32xf32>
    %6 = arith.addf %4, %5 : vector<8x32xf32>
    %7 = arith.negf %6 : vector<8x32xf32>
    %8 = math.exp %7 : vector<8x32xf32>
    %cst_6 = arith.constant 1.000000e+00 : f32
    %9 = vector.broadcast %cst_6 : f32 to vector<8x32xf32>
    %10 = arith.addf %9, %8 : vector<8x32xf32>
    %11 = arith.divf %9, %10 : vector<8x32xf32>
    %12 = arith.mulf %6, %11 : vector<8x32xf32>
    %c1 = arith.constant 1 : index
    %c0_7 = arith.constant 0 : index
    %c0_8 = arith.constant 0 : index
    %13 = vector.load %arg3[%c1, %c0_7, %c0_8] : memref<8x64x128xf32, #tpu.memory_space<vmem>>, vector<1x32x64xf32>
    %14 = vector.shape_cast %13 : vector<1x32x64xf32> to vector<32x64xf32>
    %c1_9 = arith.constant 1 : index
    %c0_10 = arith.constant 0 : index
    %15 = vector.load %arg4[%c1_9, %c0_10] : memref<8x128xf32, #tpu.memory_space<vmem>>, vector<1x64xf32>
    %cst_11 = arith.constant dense<0.000000e+00> : vector<8x64xf32>
    %16 = tpu.matmul %12, %14, %cst_11 {dimension_numbers = #tpu.dot_dimension_numbers<[1], [0], [0], [1], [0, 0, 1, 1], [], []>} : vector<8x32xf32>, vector<32x64xf32>, vector<8x64xf32> -> vector<8x64xf32>
    %17 = vector.broadcast %15 : vector<1x64xf32> to vector<8x64xf32>
    %18 = arith.addf %16, %17 : vector<8x64xf32>
    %19 = arith.negf %18 : vector<8x64xf32>
    %20 = math.exp %19 : vector<8x64xf32>
    %cst_12 = arith.constant 1.000000e+00 : f32
    %21 = vector.broadcast %cst_12 : f32 to vector<8x64xf32>
    %22 = arith.addf %21, %20 : vector<8x64xf32>
    %23 = arith.divf %21, %22 : vector<8x64xf32>
    %24 = arith.mulf %18, %23 : vector<8x64xf32>
    %c2 = arith.constant 2 : index
    %c0_13 = arith.constant 0 : index
    %c0_14 = arith.constant 0 : index
    %25 = vector.load %arg3[%c2, %c0_13, %c0_14] : memref<8x64x128xf32, #tpu.memory_space<vmem>>, vector<1x64x32xf32>
    %26 = vector.shape_cast %25 : vector<1x64x32xf32> to vector<64x32xf32>
    %c2_15 = arith.constant 2 : index
    %c0_16 = arith.constant 0 : index
    %27 = vector.load %arg4[%c2_15, %c0_16] : memref<8x128xf32, #tpu.memory_space<vmem>>, vector<1x32xf32>
    %cst_17 = arith.constant dense<0.000000e+00> : vector<8x32xf32>
    %28 = tpu.matmul %24, %26, %cst_17 {dimension_numbers = #tpu.dot_dimension_numbers<[1], [0], [0], [1], [0, 0, 1, 1], [], []>} : vector<8x64xf32>, vector<64x32xf32>, vector<8x32xf32> -> vector<8x32xf32>
    %29 = vector.broadcast %27 : vector<1x32xf32> to vector<8x32xf32>
    %30 = arith.addf %28, %29 : vector<8x32xf32>
    %31 = arith.negf %30 : vector<8x32xf32>
    %32 = math.exp %31 : vector<8x32xf32>
    %cst_18 = arith.constant 1.000000e+00 : f32
    %33 = vector.broadcast %cst_18 : f32 to vector<8x32xf32>
    %34 = arith.addf %33, %32 : vector<8x32xf32>
    %35 = arith.divf %33, %34 : vector<8x32xf32>
    %36 = arith.mulf %30, %35 : vector<8x32xf32>
    %c3 = arith.constant 3 : index
    %c0_19 = arith.constant 0 : index
    %c0_20 = arith.constant 0 : index
    %37 = vector.load %arg3[%c3, %c0_19, %c0_20] : memref<8x64x128xf32, #tpu.memory_space<vmem>>, vector<1x32x16xf32>
    %38 = vector.shape_cast %37 : vector<1x32x16xf32> to vector<32x16xf32>
    %c3_21 = arith.constant 3 : index
    %c0_22 = arith.constant 0 : index
    %39 = vector.load %arg4[%c3_21, %c0_22] : memref<8x128xf32, #tpu.memory_space<vmem>>, vector<1x16xf32>
    %cst_23 = arith.constant dense<0.000000e+00> : vector<8x16xf32>
    %40 = tpu.matmul %36, %38, %cst_23 {dimension_numbers = #tpu.dot_dimension_numbers<[1], [0], [0], [1], [0, 0, 1, 1], [], []>} : vector<8x32xf32>, vector<32x16xf32>, vector<8x16xf32> -> vector<8x16xf32>
    %41 = vector.broadcast %39 : vector<1x16xf32> to vector<8x16xf32>
    %42 = arith.addf %40, %41 : vector<8x16xf32>
    %43 = vector.extract_strided_slice %42 {offsets = [0, 0], sizes = [8, 8], strides = [1, 1]} : vector<8x16xf32> to vector<8x8xf32>
    %44 = vector.extract_strided_slice %42 {offsets = [0, 8], sizes = [8, 8], strides = [1, 1]} : vector<8x16xf32> to vector<8x8xf32>
    %cst_24 = arith.constant dense<0.000000e+00> : vector<8xf32>
    %45 = vector.multi_reduction <add>, %43, %cst_24 [1] : vector<8x8xf32> to vector<8xf32>
    %46 = vector.shape_cast %45 : vector<8xf32> to vector<8x1xf32>
    %cst_25 = arith.constant 8.000000e+00 : f32
    %47 = vector.broadcast %cst_25 : f32 to vector<8x1xf32>
    %48 = arith.divf %46, %47 : vector<8x1xf32>
    %49 = vector.broadcast %48 : vector<8x1xf32> to vector<8x8xf32>
    %50 = arith.subf %43, %49 : vector<8x8xf32>
    %51 = arith.mulf %50, %50 : vector<8x8xf32>
    %cst_26 = arith.constant dense<0.000000e+00> : vector<8xf32>
    %52 = vector.multi_reduction <add>, %51, %cst_26 [1] : vector<8x8xf32> to vector<8xf32>
    %53 = vector.shape_cast %52 : vector<8xf32> to vector<8x1xf32>
    %cst_27 = arith.constant 8.000000e+00 : f32
    %54 = vector.broadcast %cst_27 : f32 to vector<8x1xf32>
    %55 = arith.divf %53, %54 : vector<8x1xf32>
    %cst_28 = arith.constant 9.99999974E-6 : f32
    %56 = vector.broadcast %cst_28 : f32 to vector<8x1xf32>
    %57 = arith.addf %55, %56 : vector<8x1xf32>
    %58 = math.rsqrt %57 : vector<8x1xf32>
    %59 = vector.broadcast %58 : vector<8x1xf32> to vector<8x8xf32>
    %60 = arith.mulf %50, %59 : vector<8x8xf32>
    %cst_29 = arith.constant 4.000000e+00 : f32
    %61 = vector.broadcast %cst_29 : f32 to vector<8x8xf32>
    %62 = arith.minimumf %44, %61 : vector<8x8xf32>
    %cst_30 = arith.constant 5.000000e-01 : f32
    %63 = vector.broadcast %cst_30 : f32 to vector<8x8xf32>
    %64 = arith.mulf %63, %62 : vector<8x8xf32>
    %65 = math.exp %64 : vector<8x8xf32>
    %c0_31 = arith.constant 0 : index
    %c0_32 = arith.constant 0 : index
    %66 = vector.load %arg2[%c0_31, %c0_32] : memref<8x8xf32, #tpu.memory_space<vmem>>, vector<8x8xf32>
    %67 = arith.mulf %66, %65 : vector<8x8xf32>
    %68 = arith.addf %60, %67 : vector<8x8xf32>
    %c4 = arith.constant 4 : index
    %c0_33 = arith.constant 0 : index
    %c0_34 = arith.constant 0 : index
    %69 = vector.load %arg3[%c4, %c0_33, %c0_34] : memref<8x64x128xf32, #tpu.memory_space<vmem>>, vector<1x8x32xf32>
    %70 = vector.shape_cast %69 : vector<1x8x32xf32> to vector<8x32xf32>
    %c4_35 = arith.constant 4 : index
    %c0_36 = arith.constant 0 : index
    %71 = vector.load %arg4[%c4_35, %c0_36] : memref<8x128xf32, #tpu.memory_space<vmem>>, vector<1x32xf32>
    %cst_37 = arith.constant dense<0.000000e+00> : vector<8x32xf32>
    %72 = tpu.matmul %68, %70, %cst_37 {dimension_numbers = #tpu.dot_dimension_numbers<[1], [0], [0], [1], [0, 0, 1, 1], [], []>} : vector<8x8xf32>, vector<8x32xf32>, vector<8x32xf32> -> vector<8x32xf32>
    %73 = vector.broadcast %71 : vector<1x32xf32> to vector<8x32xf32>
    %74 = arith.addf %72, %73 : vector<8x32xf32>
    %75 = arith.negf %74 : vector<8x32xf32>
    %76 = math.exp %75 : vector<8x32xf32>
    %cst_38 = arith.constant 1.000000e+00 : f32
    %77 = vector.broadcast %cst_38 : f32 to vector<8x32xf32>
    %78 = arith.addf %77, %76 : vector<8x32xf32>
    %79 = arith.divf %77, %78 : vector<8x32xf32>
    %80 = arith.mulf %74, %79 : vector<8x32xf32>
    %c5 = arith.constant 5 : index
    %c0_39 = arith.constant 0 : index
    %c0_40 = arith.constant 0 : index
    %81 = vector.load %arg3[%c5, %c0_39, %c0_40] : memref<8x64x128xf32, #tpu.memory_space<vmem>>, vector<1x32x64xf32>
    %82 = vector.shape_cast %81 : vector<1x32x64xf32> to vector<32x64xf32>
    %c5_41 = arith.constant 5 : index
    %c0_42 = arith.constant 0 : index
    %83 = vector.load %arg4[%c5_41, %c0_42] : memref<8x128xf32, #tpu.memory_space<vmem>>, vector<1x64xf32>
    %cst_43 = arith.constant dense<0.000000e+00> : vector<8x64xf32>
    %84 = tpu.matmul %80, %82, %cst_43 {dimension_numbers = #tpu.dot_dimension_numbers<[1], [0], [0], [1], [0, 0, 1, 1], [], []>} : vector<8x32xf32>, vector<32x64xf32>, vector<8x64xf32> -> vector<8x64xf32>
    %85 = vector.broadcast %83 : vector<1x64xf32> to vector<8x64xf32>
    %86 = arith.addf %84, %85 : vector<8x64xf32>
    %87 = arith.negf %86 : vector<8x64xf32>
    %88 = math.exp %87 : vector<8x64xf32>
    %cst_44 = arith.constant 1.000000e+00 : f32
    %89 = vector.broadcast %cst_44 : f32 to vector<8x64xf32>
    %90 = arith.addf %89, %88 : vector<8x64xf32>
    %91 = arith.divf %89, %90 : vector<8x64xf32>
    %92 = arith.mulf %86, %91 : vector<8x64xf32>
    %c6 = arith.constant 6 : index
    %c0_45 = arith.constant 0 : index
    %c0_46 = arith.constant 0 : index
    %93 = vector.load %arg3[%c6, %c0_45, %c0_46] : memref<8x64x128xf32, #tpu.memory_space<vmem>>, vector<1x64x32xf32>
    %94 = vector.shape_cast %93 : vector<1x64x32xf32> to vector<64x32xf32>
    %c6_47 = arith.constant 6 : index
    %c0_48 = arith.constant 0 : index
    %95 = vector.load %arg4[%c6_47, %c0_48] : memref<8x128xf32, #tpu.memory_space<vmem>>, vector<1x32xf32>
    %cst_49 = arith.constant dense<0.000000e+00> : vector<8x32xf32>
    %96 = tpu.matmul %92, %94, %cst_49 {dimension_numbers = #tpu.dot_dimension_numbers<[1], [0], [0], [1], [0, 0, 1, 1], [], []>} : vector<8x64xf32>, vector<64x32xf32>, vector<8x32xf32> -> vector<8x32xf32>
    %97 = vector.broadcast %95 : vector<1x32xf32> to vector<8x32xf32>
    %98 = arith.addf %96, %97 : vector<8x32xf32>
    %99 = arith.negf %98 : vector<8x32xf32>
    %100 = math.exp %99 : vector<8x32xf32>
    %cst_50 = arith.constant 1.000000e+00 : f32
    %101 = vector.broadcast %cst_50 : f32 to vector<8x32xf32>
    %102 = arith.addf %101, %100 : vector<8x32xf32>
    %103 = arith.divf %101, %102 : vector<8x32xf32>
    %104 = arith.mulf %98, %103 : vector<8x32xf32>
    %c7 = arith.constant 7 : index
    %c0_51 = arith.constant 0 : index
    %c0_52 = arith.constant 0 : index
    %105 = vector.load %arg3[%c7, %c0_51, %c0_52] : memref<8x64x128xf32, #tpu.memory_space<vmem>>, vector<1x32x16xf32>
    %106 = vector.shape_cast %105 : vector<1x32x16xf32> to vector<32x16xf32>
    %c7_53 = arith.constant 7 : index
    %c0_54 = arith.constant 0 : index
    %107 = vector.load %arg4[%c7_53, %c0_54] : memref<8x128xf32, #tpu.memory_space<vmem>>, vector<1x16xf32>
    %cst_55 = arith.constant dense<0.000000e+00> : vector<8x16xf32>
    %108 = tpu.matmul %104, %106, %cst_55 {dimension_numbers = #tpu.dot_dimension_numbers<[1], [0], [0], [1], [0, 0, 1, 1], [], []>} : vector<8x32xf32>, vector<32x16xf32>, vector<8x16xf32> -> vector<8x16xf32>
    %109 = vector.broadcast %107 : vector<1x16xf32> to vector<8x16xf32>
    %110 = arith.addf %108, %109 : vector<8x16xf32>
    %111 = tpu.concatenate %110, %68, %60, %62 in 1 : vector<8x16xf32>, vector<8x8xf32>, vector<8x8xf32>, vector<8x8xf32> -> vector<8x40xf32>
    %cst_56 = arith.constant 0.000000e+00 : f32
    %112 = vector.broadcast %cst_56 : f32 to vector<8x88xf32>
    %113 = tpu.concatenate %111, %112 in 1 : vector<8x40xf32>, vector<8x88xf32> -> vector<8x128xf32>
    %c0_57 = arith.constant 0 : index
    %c0_58 = arith.constant 0 : index
    %114 = vector.load %arg5[%c0_57, %c0_58] : memref<8x128xf32, #tpu.memory_space<vmem>>, vector<8x128xf32>
    tpu.vector_store %arg5[%c0_57, %c0_58], %113 {strides = array<i32>} : memref<8x128xf32, #tpu.memory_space<vmem>>, vector<8x128xf32>,
    return
  }
  func.func @transform_0(%arg0: i32) -> (i32, i32) {
    %c0_i32 = arith.constant 0 : i32
    %c0_i32_0 = arith.constant 0 : i32
    return %arg0, %c0_i32 : i32, i32
  }
  func.func @transform_1(%arg0: i32) -> (i32, i32) {
    %c0_i32 = arith.constant 0 : i32
    %c0_i32_0 = arith.constant 0 : i32
    return %arg0, %c0_i32 : i32, i32
  }
  func.func @transform_2(%arg0: i32) -> (i32, i32, i32) {
    %c0_i32 = arith.constant 0 : i32
    %c0_i32_0 = arith.constant 0 : i32
    %c0_i32_1 = arith.constant 0 : i32
    %c0_i32_2 = arith.constant 0 : i32
    return %c0_i32, %c0_i32_0, %c0_i32_1 : i32, i32, i32
  }
  func.func @transform_3(%arg0: i32) -> (i32, i32) {
    %c0_i32 = arith.constant 0 : i32
    %c0_i32_0 = arith.constant 0 : i32
    %c0_i32_1 = arith.constant 0 : i32
    return %c0_i32, %c0_i32_0 : i32, i32
  }
  func.func @transform_4(%arg0: i32) -> (i32, i32) {
    %c0_i32 = arith.constant 0 : i32
    %c0_i32_0 = arith.constant 0 : i32
    return %arg0, %c0_i32 : i32, i32
  }
}

</mosaic_0001>

<bundles_post_ra>
// kernel: tpu_custom_call.1
= control target key start
LH: loop header
LB: loop body
LE: loop exit
PB: predicated region body
PF: predicated region fallthrough
CT: control target
= control target key end

     0   :  { %9 = vsyncpa [#allocation3], 0  ;;  %s1262_s0 = inlined_call_operand.hbm [shape: f32[8,16], index: 0, kind: input, shape index: {}]   ;;  %s1263_s1 = inlined_call_operand.hbm [shape: f32[8,8], index: 1, kind: input, shape index: {}]   ;;  %s1264_s2 = inlined_call_operand.hbm [shape: f32[8,64,128], index: 2, kind: input, shape index: {}]   ;;  %s1265_s3 = inlined_call_operand.hbm [shape: f32[8,128], index: 3, kind: input, shape index: {}]   ;;  %s1266_s4 = inlined_call_operand.hbm [shape: f32[8,128], index: 4, kind: output, shape index: {}]  }
   0x1   :  { %10 = vsyncpa [#allocation6], 0 }
   0x2   :  { %11 = vsyncpa [#allocation9], 0 }
   0x3   :  { %12 = vsyncpa [#allocation4], 0  ;;  %s1147_s15 = smov [#allocation5]   ;;  %s1148_s17 = smov [#allocation2]  }
   0x4   :  { %s29_s16 = sshll.u32 %s1147_s15, 4  ;;  %s19_s18 = sshll.u32 %s1148_s17, 4  ;;  %s30_s16 = int_to_ptr.vmem [resolvable:$true] %s29_s16  ;;  %s20_s18 = int_to_ptr.vmem [resolvable:$true] %s19_s18 }
   0x5   :  { %s1047_s19 = scalar_lea.vmem %s30_s16, 128  ;;  %p1052_p1 = scmp.lt.s32.totalorder %s30_s16, %s30_s16 }
   0x6   :  { %p1048_p0 = scmp.ne.s32.totalorder %s30_s16, %s1047_s19  ;;  %p1053_p2 = scmp.lt.s32.totalorder %s1047_s19, %s1047_s19 }
   0x8   :  { %p1054_p3 = por %p1053_p2, %p1052_p1 }
   0xa   :  { %p1055_p4 = pnand %p1054_p3, %p1048_p0 }
   0xc   :  { %1058 = shalt.err (!%p1055_p4)
}
   0xd   :  { %32 = dma.hbm_to_vmem [thread:$0]  %s1263_s1, 128, %s30_s16, [#allocation6]  }
   0xe   :  { %s1067_s22 = scalar_lea.vmem %s20_s18, 128  ;;  %p1072_p6 = scmp.lt.s32.totalorder %s20_s18, %s20_s18 }
   0xf   :  { %p1068_p5 = scmp.ne.s32.totalorder %s20_s18, %s1067_s22  ;;  %p1073_p7 = scmp.lt.s32.totalorder %s1067_s22, %s1067_s22 }
  0x11   :  { %p1074_p8 = por %p1073_p7, %p1072_p6 }
  0x13   :  { %p1075_p9 = pnand %p1074_p8, %p1068_p5 }
  0x15   :  { %1078 = shalt.err (!%p1075_p9)
}
  0x16   :  { %22 = dma.hbm_to_vmem [thread:$0]  %s1262_s0, 128, %s20_s18, [#allocation3]  }
  0x17   :  { %s1149_s25 = smov [#allocation7]  }
  0x18   :  { %s38_s26 = sshll.u32 %s1149_s25, 4  ;;  %s39_s26 = int_to_ptr.vmem [resolvable:$true] %s38_s26 }
  0x19   :  { %s1087_s27 = scalar_lea.vmem %s39_s26, 8192  ;;  %p1092_p11 = scmp.lt.s32.totalorder %s39_s26, %s39_s26 }
  0x1a   :  { %p1088_p10 = scmp.ne.s32.totalorder %s39_s26, %s1087_s27  ;;  %p1093_p12 = scmp.lt.s32.totalorder %s1087_s27, %s1087_s27 }
  0x1c   :  { %p1094_p13 = por %p1093_p12, %p1092_p11 }
  0x1e   :  { %p1095_p0 = pnand %p1094_p13, %p1088_p10 }
  0x20   :  { %1098 = shalt.err (!%p1095_p0)
}
  0x21   :  { %s1150_s1 = smov 128   ;;  %s1151_s28 = smov 8  }
  0x22   :  { %44 = dma.hbm_to_vmem [thread:$0]  %s1264_s2, 8192, %s39_s26, [#allocation6], %s1150_s1, %s1150_s1, %s1151_s28  }
  0x23   :  { %s1152_s5 = smov [#allocation8]  }
  0x24   :  { %s51_s6 = sshll.u32 %s1152_s5, 4  ;;  %s52_s6 = int_to_ptr.vmem [resolvable:$true] %s51_s6 }
  0x25   :  { %s1107_s0 = scalar_lea.vmem %s52_s6, 128  ;;  %p1112_p2 = scmp.lt.s32.totalorder %s52_s6, %s52_s6 }
  0x26   :  { %p1108_p1 = scmp.ne.s32.totalorder %s52_s6, %s1107_s0  ;;  %p1113_p3 = scmp.lt.s32.totalorder %s1107_s0, %s1107_s0 }
  0x28   :  { %p1114_p4 = por %p1113_p3, %p1112_p2 }
  0x2a   :  { %p1115_p5 = pnand %p1114_p4, %p1108_p1 }
  0x2c   :  { %1118 = shalt.err (!%p1115_p5)
}
  0x2d   :  { %54 = dma.hbm_to_vmem [thread:$0]  %s1265_s3, 128, %s52_s6, [#allocation9]  }
  0x2e   :  { %1139 = dma.done.wait [#allocation3], 128  }
  0x2f   :  { %1140 = vsyncadd [#allocation3], 4294967168 }
  0x30   :  { %1141 = dma.done.wait [#allocation6], 8320  }
  0x31   :  { %1142 = vsyncadd [#allocation6], 4294958976 }
  0x32   :  { %1143 = dma.done.wait [#allocation9], 128  }
  0x33   :  { %1144 = vsyncadd [#allocation9], 4294967168  ;;  %v1153_v0 = vmov 0.0   ;;  %vm1154_vm0 = vmmov 0   ;;  %v69_v1 = vld [vmem:[#allocation7 + $0x8] sm:$0xff]  ;;  %v68_v2 = vld [vmem:[#allocation7] sm:$0xff] }
  0x34   :  { %905 = vmatprep.subr.mxu0 %v1153_v0  ;;  %909 = vmatprep.mubr.msk.f32.mxu0 %vm1154_vm0, %v1153_v0  ;;  %v67_v3 = vld [vmem:[#allocation2] sm:$0xff]  ;;  %vm75_vm1 = vcmask 130048   ;;  %v160_v4 = vld [vmem:[#allocation7 + $0x58] sm:$0xff]  ;;  %v158_v6 = vld [vmem:[#allocation7 + $0x48] sm:$0xff]  ;;  %vm166_vm2 = vcmask 261120   ;;  %vm261_vm3 = vcmask 523264  }
  0x35   :  { %912 = vmatprep.subr.mxu1 %v1153_v0  ;;  %920 = vmatprep.mubr.msk.f32.mxu1 %vm1154_vm0, %v1153_v0  ;;  %v159_v5 = vld [vmem:[#allocation7 + $0x50] sm:$0xff]  ;;  %v157_v7 = vld [vmem:[#allocation7 + $0x40] sm:$0xff]  ;;  %v255_v17 = vld [vmem:[#allocation7 + $0xb8] sm:$0xff]  ;;  %vm425_vm4 = vcmask 64512   ;;  %s1155_s2 = smov 120   ;;  %s1156_s3 = smov 24  }
  0x36   :  { %906 = vmatpush3.msra.mxu0 %v69_v1  ;;  %913 = vmatpush3.msra.mxu1 %v160_v4  ;;  %v840_v8 = vld [vmem:[#allocation8] ss:$0 sm:$0xff]  ;;  %v254_v18 = vld [vmem:[#allocation7 + $0xb0] sm:$0xff]  ;;  %v253_v19 = vld [vmem:[#allocation7 + $0xa8] sm:$0xff]  ;;  %s1157_s9 = smov 16   ;;  %vm817_vm5 = vcmask 195584  }
  0x37   :  { %907 = vmatprep.subr.mxu0 %v1153_v0  ;;  %914 = vmatprep.subr.mxu1 %v1153_v0  ;;  %v252_v20 = vld [vmem:[#allocation7 + $0xa0] sm:$0xff]  ;;  %v251_v21 = vld [vmem:[#allocation7 + $0x98] sm:$0xff]  ;;  %v250_v22 = vld [vmem:[#allocation7 + $0x90] sm:$0xff]  ;;  %s1158_s10 = smov [#allocation10]   ;;  %vm820_vm6 = vcmask 326656  }
  0x38   :  { %908 = vmatpush3.msra.mxu0 %v68_v2  ;;  %915 = vmatpush3.msra.mxu1 %v159_v5  ;;  %v249_v23 = vld [vmem:[#allocation7 + $0x88] sm:$0xff]  ;;  %v248_v24 = vld [vmem:[#allocation7 + $0x80] sm:$0xff]  ;;  %v346_v34 = vld [vmem:[#allocation7 + $0xd8] sm:$0xff]  ;;  %s829_s11 = sshll.u32 %s1158_s10, 4  ;;  %s830_s11 = int_to_ptr.vmem [resolvable:$true] %s829_s11 }
  0x39   :  { %910 = vmatmul.mubr.msk.f32.vlgmr.msra.gmra.mxu0 %vm75_vm1, %v67_v3  ;;  %923 = vmatprep.subr.mxu0 %v1153_v0  ;;  %v843_v25 = vld [vmem:[#allocation8 + $0x1] ss:$0 sm:$0xff]  ;;  %v345_v35 = vld [vmem:[#allocation7 + $0xd0] sm:$0xff]  ;;  %v344_v36 = vld [vmem:[#allocation7 + $0xc8] sm:$0xff]  ;;  %s1119_s12 = scalar_lea.vmem %s830_s11, 128  ;;  %p1124_p7 = scmp.lt.s32.totalorder %s830_s11, %s830_s11 }
  0x3a   :  { %939 = vmatprep.mubr.msk.f32.mxu0 %vm1154_vm0, %v1153_v0  ;;  %916 = vmatprep.subr.mxu1 %v1153_v0  ;;  %v343_v37 = vld [vmem:[#allocation7 + $0xc0] sm:$0xff]  ;;  %v444_v2 = vld [vmem:[#allocation5] sm:$0xff]  ;;  %p1120_p6 = scmp.ne.s32.totalorder %s830_s11, %s1119_s12  ;;  %p1125_p8 = scmp.lt.s32.totalorder %s1119_s12, %s1119_s12 }
  0x3b   :  { %917 = vmatpush3.msra.mxu1 %v158_v6  ;;  %924 = vmatpush3.msra.mxu0 %v255_v17  ;;  %v846_v38 = vld [vmem:[#allocation8 + $0x2] ss:$0 sm:$0xff]  ;;  %v849_v47 = vld [vmem:[#allocation8 + $0x3] ss:$0 sm:$0xff] }
  0x3c   :  { %918 = vmatprep.subr.mxu1 %v1153_v0  ;;  %925 = vmatprep.subr.mxu0 %v1153_v0  ;;  %v452_v61 = vld [vmem:[#allocation7 + $0x100] sm:$0xff]  ;;  %p1126_p9 = por %p1125_p8, %p1124_p7 }
  0x3d   :  { %919 = vmatpush3.msra.mxu1 %v157_v7  ;;  %926 = vmatpush3.msra.mxu0 %v254_v18 }
  0x3e   :  { %942 = vmatprep.subr.mxu1 %v1153_v0  ;;  %927 = vmatprep.subr.mxu0 %v1153_v0  ;;  %p1127_p10 = pnand %p1126_p9, %p1120_p6 }
  0x3f   :  { %928 = vmatpush3.msra.mxu0 %v253_v19 }
  0x40   :  { %929 = vmatprep.subr.mxu0 %v1153_v0 }
  0x41   :  { %930 = vmatpush3.msra.mxu0 %v252_v20 }
  0x42   :  { %931 = vmatprep.subr.mxu0 %v1153_v0 }
  0x43   :  { %932 = vmatpush3.msra.mxu0 %v251_v21  ;;  %v636_v21 = vld [vmem:[#allocation7 + $0x1b8] sm:$0xff] }
  0x44   :  { %933 = vmatprep.subr.mxu0 %v1153_v0 }
  0x45   :  { %934 = vmatpush3.msra.mxu0 %v250_v22  ;;  %v635_v22 = vld [vmem:[#allocation7 + $0x1b0] sm:$0xff] }
  0x46   :  { %935 = vmatprep.subr.mxu0 %v1153_v0 }
  0x47   :  { %936 = vmatpush3.msra.mxu0 %v249_v23  ;;  %v634_v23 = vld [vmem:[#allocation7 + $0x1a8] sm:$0xff] }
  0x48   :  { %937 = vmatprep.subr.mxu0 %v1153_v0 }
  0x49   :  { %938 = vmatpush3.msra.mxu0 %v248_v24  ;;  %v633_v24 = vld [vmem:[#allocation7 + $0x1a0] sm:$0xff] }
  0x4a   :  { %958 = vmatprep.subr.mxu0 %v1153_v0 }
  0xf9   :  { %v145_v9 = vpop.f32.mrf.mxu0 }
  0xfa   :  { %v146_v10 = vadd.f32 %v840_v8, %v145_v9  ;;  %v542_v8 = vld [vmem:[#allocation7 + $0x158] sm:$0xff]  ;;  %v541_v9 = vld [vmem:[#allocation7 + $0x150] sm:$0xff] }
  0xfb   :  { %v911_v11 = vpop.f32.mrf.mxu0 }
  0xfc   :  { %v842_v12 = vmul.f32 -1.442695, %v146_v10  ;;  %v539_v11 = vld [vmem:[#allocation7 + $0x140] sm:$0xff] }
  0xfe   :  { %1011 = vpow2.f32 %v842_v12  ;;  %v851_v12 = vld [vmem:[#allocation8 + $0x4] ss:$0 sm:$0xff] }
 0x10b   :  { %v1012_v13 = vpop.eup %1011 }
 0x10c   :  { %v152_v14 = vadd.f32 1.0, %v1012_v13 }
 0x10e   :  { %1013 = vrcp.f32 %v152_v14 }
 0x11b   :  { %v1014_v15 = vpop.eup %1013 }
 0x11c   :  { %v155_v16 = vmul.f32 %v1014_v15, %v146_v10  ;;  %v540_v10 = vld [vmem:[#allocation7 + $0x148] sm:$0xff] }
 0x11e   :  { %921 = vmatmul.mubr.msk.f32.vlgmr.msra.gmra.mxu1 %vm166_vm2, %v155_v16 }
 0x11f   :  { %950 = vmatprep.mubr.msk.f32.mxu1 %vm1154_vm0, %v1153_v0  ;;  %943 = vmatpush3.msra.mxu1 %v346_v34 }
 0x120   :  { %944 = vmatprep.subr.mxu1 %v1153_v0 }
 0x121   :  { %945 = vmatpush3.msra.mxu1 %v345_v35 }
 0x122   :  { %946 = vmatprep.subr.mxu1 %v1153_v0 }
 0x123   :  { %947 = vmatpush3.msra.mxu1 %v344_v36 }
 0x124   :  { %948 = vmatprep.subr.mxu1 %v1153_v0 }
 0x125   :  { %949 = vmatpush3.msra.mxu1 %v343_v37 }
 0x126   :  { %953 = vmatprep.subr.mxu1 %v1153_v0 }
 0x1de   :  { %v236_v26 = vpop.f32.mrf.mxu1 }
 0x1df   :  { %v237_v27 = vadd.f32 %v843_v25, %v236_v26  ;;  %v632_v25 = vld [vmem:[#allocation7 + $0x198] sm:$0xff]  ;;  %v631_v26 = vld [vmem:[#allocation7 + $0x190] sm:$0xff] }
 0x1e0   :  { %v922_v28 = vpop.f32.mrf.mxu1 }
 0x1e1   :  { %v845_v29 = vmul.f32 -1.442695, %v237_v27  ;;  %v629_v28 = vld [vmem:[#allocation7 + $0x180] sm:$0xff] }
 0x1e3   :  { %1015 = vpow2.f32 %v845_v29  ;;  %v854_v29 = vld [vmem:[#allocation8 + $0x5] ss:$0 sm:$0xff] }
 0x1f0   :  { %v1016_v30 = vpop.eup %1015 }
 0x1f1   :  { %v243_v31 = vadd.f32 1.0, %v1016_v30 }
 0x1f3   :  { %1017 = vrcp.f32 %v243_v31 }
 0x200   :  { %v1018_v32 = vpop.eup %1017 }
 0x201   :  { %v246_v33 = vmul.f32 %v1018_v32, %v237_v27  ;;  %v630_v27 = vld [vmem:[#allocation7 + $0x188] sm:$0xff] }
 0x203   :  { %940 = vmatmul.mubr.msk.f32.vlgmr.msra.gmra.mxu0 %vm261_vm3, %v246_v33 }
 0x204   :  { %966 = vmatprep.mubr.msk.f32.mxu0 %vm1154_vm0, %v1153_v0  ;;  %959 = vmatpush3.msra.mxu0 %v542_v8 }
 0x205   :  { %960 = vmatprep.subr.mxu0 %v1153_v0 }
 0x206   :  { %961 = vmatpush3.msra.mxu0 %v541_v9 }
 0x207   :  { %962 = vmatprep.subr.mxu0 %v1153_v0 }
 0x208   :  { %963 = vmatpush3.msra.mxu0 %v540_v10 }
 0x209   :  { %964 = vmatprep.subr.mxu0 %v1153_v0 }
 0x20a   :  { %965 = vmatpush3.msra.mxu0 %v539_v11 }
 0x20b   :  { %988 = vmatprep.subr.mxu0 %v1153_v0 }
 0x2c3   :  { %v331_v39 = vpop.f32.mrf.mxu0 }
 0x2c4   :  { %v332_v40 = vadd.f32 %v846_v38, %v331_v39  ;;  %v726_v38 = vld [vmem:[#allocation7 + $0x1d8] sm:$0xff]  ;;  %v725_v39 = vld [vmem:[#allocation7 + $0x1d0] sm:$0xff] }
 0x2c5   :  { %v941_v41 = vpop.f32.mrf.mxu0 }
 0x2c6   :  { %v848_v42 = vmul.f32 -1.442695, %v332_v40  ;;  %v723_v41 = vld [vmem:[#allocation7 + $0x1c0] sm:$0xff] }
 0x2c8   :  { %1019 = vpow2.f32 %v848_v42  ;;  %v857_v42 = vld [vmem:[#allocation8 + $0x6] ss:$0 sm:$0xff] }
 0x2d5   :  { %v1020_v43 = vpop.eup %1019 }
 0x2d6   :  { %v338_v44 = vadd.f32 1.0, %v1020_v43 }
 0x2d8   :  { %1021 = vrcp.f32 %v338_v44 }
 0x2e5   :  { %v1022_v45 = vpop.eup %1021 }
 0x2e6   :  { %v341_v46 = vmul.f32 %v1022_v45, %v332_v40  ;;  %v724_v40 = vld [vmem:[#allocation7 + $0x1c8] sm:$0xff] }
 0x2e8   :  { %951 = vmatmul.mubr.msk.f32.vlgmr.msra.gmra.mxu1 %vm166_vm2, %v341_v46 }
 0x2e9   :  { %955 = vmatprep.mubr.msk.f32.mxu1 %vm1154_vm0, %v1153_v0  ;;  %954 = vmatpush3.msra.mxu1 %v452_v61 }
 0x2ea   :  { %969 = vmatprep.subr.mxu1 %v1153_v0 }
 0x3a8   :  { %v421_v48 = vpop.f32.mrf.mxu1 }
 0x3a9   :  { %v422_v49 = vadd.f32 %v849_v47, %v421_v48 }
 0x3aa   :  { %v952_v50 = vpop.f32.mrf.mxu1 }
 0x3ab   :  { %v440_v51 = vmin.f32 %v422_v49, 4.0  ;;  %v426_v52 = vsel %vm425_vm4, %v422_v49, 0.0 }
 0x3ac   :  { %427 = vadd.xlane.f32.xlu0 %v426_v52  ;;  %v860_v52 = vld [vmem:[#allocation8 + $0x7] ss:$0 sm:$0xff] }
 0x3ad   :  { %v441_v53 = vmul.f32 0.5, %v440_v51 }
 0x3af   :  { %v442_v54 = vmul.f32 1.442695, %v441_v53 }
 0x3b1   :  { %1023 = vpow2.f32 %v442_v54 }
 0x3be   :  { %v1024_v55 = vpop.eup %1023 }
 0x3bf   :  { %446 = vrot.lane.b32.xlu1 %v1024_v55, %s1155_s2 }
 0x431   :  { %v447_v3 = vpop.permute.xlu1 %446 }
 0x432   :  { %v449_v5 = vmul.f32 %v447_v3, %v444_v2 }
 0x435   :  { %v428_v56 = vpop.xlane.xlu0 %427 }
 0x436   :  { %v430_v57 = vmul.f32 0.125, %v428_v56 }
 0x438   :  { %v431_v58 = vsub.f32 %v422_v49, %v430_v57 }
 0x43a   :  { %v432_v59 = vmul.f32 %v431_v58, %v431_v58 }
 0x43c   :  { %v433_v60 = vsel %vm425_vm4, %v432_v59, 0.0 }
 0x43d   :  { %434 = vadd.xlane.f32.xlu0 %v433_v60 }
 0x4c6   :  { %v435_v62 = vpop.xlane.xlu0 %434 }
 0x4c7   :  { %v436_v63 = vmul.f32 0.125, %v435_v62 }
 0x4c9   :  { %v437_v1 = vadd.f32 1e-05, %v436_v63 }
 0x4cb   :  { %1025 = vrsqrt.f32 %v437_v1 }
 0x4d8   :  { %v1026_v4 = vpop.eup %1025 }
 0x4d9   :  { %v439_v6 = vmul.f32 %v1026_v4, %v431_v58 }
 0x4db   :  { %809 = vrot.lane.b32.xlu0 %v439_v6, %s1156_s3  ;;  %v450_v7 = vadd.f32 %v449_v5, %v439_v6 }
 0x4dd   :  { %805 = vrot.lane.b32.xlu1 %v450_v7, %s1157_s9  ;;  %956 = vmatmul.mubr.msk.f32.vlgmr.msra.gmra.mxu1 %vm425_vm4, %v450_v7 }
 0x4de   :  { %985 = vmatprep.mubr.msk.f32.mxu1 %vm1154_vm0, %v1153_v0  ;;  %970 = vmatpush3.msra.mxu1 %v636_v21 }
 0x4df   :  { %971 = vmatprep.subr.mxu1 %v1153_v0 }
 0x4e0   :  { %972 = vmatpush3.msra.mxu1 %v635_v22 }
 0x4e1   :  { %813 = vrot.lane.b32.xlu1 %v440_v51, %s1156_s3  ;;  %973 = vmatprep.subr.mxu1 %v1153_v0 }
 0x4e2   :  { %974 = vmatpush3.msra.mxu1 %v634_v23 }
 0x4e3   :  { %975 = vmatprep.subr.mxu1 %v1153_v0 }
 0x4e4   :  { %976 = vmatpush3.msra.mxu1 %v633_v24 }
 0x4e5   :  { %977 = vmatprep.subr.mxu1 %v1153_v0 }
 0x4e6   :  { %978 = vmatpush3.msra.mxu1 %v632_v25 }
 0x4e7   :  { %979 = vmatprep.subr.mxu1 %v1153_v0 }
 0x4e8   :  { %980 = vmatpush3.msra.mxu1 %v631_v26 }
 0x4e9   :  { %981 = vmatprep.subr.mxu1 %v1153_v0 }
 0x4ea   :  { %982 = vmatpush3.msra.mxu1 %v630_v27 }
 0x4eb   :  { %983 = vmatprep.subr.mxu1 %v1153_v0 }
 0x4ec   :  { %984 = vmatpush3.msra.mxu1 %v629_v28 }
 0x54d   :  { %v810_v55 = vpop.permute.xlu0 %809 }
 0x54f   :  { %v806_v51 = vpop.permute.xlu1 %805 }
 0x553   :  { %v814_v57 = vpop.permute.xlu1 %813 }
 0x59d   :  { %v527_v13 = vpop.f32.mrf.mxu1 }
 0x59e   :  { %v528_v14 = vadd.f32 %v851_v12, %v527_v13 }
 0x59f   :  { %v957_v15 = vpop.f32.mrf.mxu1 }
 0x5a0   :  { %v853_v16 = vmul.f32 -1.442695, %v528_v14 }
 0x5a2   :  { %1027 = vpow2.f32 %v853_v16 }
 0x5af   :  { %v1028_v17 = vpop.eup %1027 }
 0x5b0   :  { %v534_v18 = vadd.f32 1.0, %v1028_v17 }
 0x5b2   :  { %1029 = vrcp.f32 %v534_v18 }
 0x5bf   :  { %v1030_v19 = vpop.eup %1029 }
 0x5c0   :  { %v537_v20 = vmul.f32 %v1030_v19, %v528_v14 }
 0x5c2   :  { %967 = vmatmul.mubr.msk.f32.vlgmr.msra.gmra.mxu0 %vm166_vm2, %v537_v20 }
 0x5c3   :  { %996 = vmatprep.mubr.msk.f32.mxu0 %vm1154_vm0, %v1153_v0  ;;  %989 = vmatpush3.msra.mxu0 %v726_v38 }
 0x5c4   :  { %990 = vmatprep.subr.mxu0 %v1153_v0 }
 0x5c5   :  { %991 = vmatpush3.msra.mxu0 %v725_v39 }
 0x5c6   :  { %992 = vmatprep.subr.mxu0 %v1153_v0 }
 0x5c7   :  { %993 = vmatpush3.msra.mxu0 %v724_v40 }
 0x5c8   :  { %994 = vmatprep.subr.mxu0 %v1153_v0 }
 0x5c9   :  { %995 = vmatpush3.msra.mxu0 %v723_v41 }
 0x682   :  { %v617_v30 = vpop.f32.mrf.mxu0 }
 0x683   :  { %v618_v31 = vadd.f32 %v854_v29, %v617_v30 }
 0x684   :  { %v968_v32 = vpop.f32.mrf.mxu0 }
 0x685   :  { %v856_v33 = vmul.f32 -1.442695, %v618_v31 }
 0x687   :  { %1031 = vpow2.f32 %v856_v33 }
 0x694   :  { %v1032_v34 = vpop.eup %1031 }
 0x695   :  { %v624_v35 = vadd.f32 1.0, %v1032_v34 }
 0x697   :  { %1033 = vrcp.f32 %v624_v35 }
 0x6a4   :  { %v1034_v36 = vpop.eup %1033 }
 0x6a5   :  { %v627_v37 = vmul.f32 %v1034_v36, %v618_v31 }
 0x6a7   :  { %986 = vmatmul.mubr.msk.f32.vlgmr.msra.gmra.mxu1 %vm261_vm3, %v627_v37 }
 0x767   :  { %v711_v43 = vpop.f32.mrf.mxu1 }
 0x768   :  { %v712_v44 = vadd.f32 %v857_v42, %v711_v43 }
 0x769   :  { %v987_v45 = vpop.f32.mrf.mxu1 }
 0x76a   :  { %v859_v46 = vmul.f32 -1.442695, %v712_v44 }
 0x76c   :  { %1035 = vpow2.f32 %v859_v46 }
 0x779   :  { %v1036_v47 = vpop.eup %1035 }
 0x77a   :  { %v718_v48 = vadd.f32 1.0, %v1036_v47 }
 0x77c   :  { %1037 = vrcp.f32 %v718_v48 }
 0x789   :  { %v1038_v49 = vpop.eup %1037 }
 0x78a   :  { %v721_v50 = vmul.f32 %v1038_v49, %v712_v44 }
 0x78c   :  { %997 = vmatmul.mubr.msk.f32.vlgmr.msra.gmra.mxu0 %vm166_vm2, %v721_v50 }
 0x84c   :  { %v801_v53 = vpop.f32.mrf.mxu0 }
 0x84d   :  { %v802_v54 = vadd.f32 %v860_v52, %v801_v53 }
 0x84e   :  { %v998_v0 = vpop.f32.mrf.mxu0 }
 0x84f   :  { %v816_v56 = vsel %vm75_vm1, %v802_v54, %v806_v51 }
 0x850   :  { %v818_v58 = vsel %vm817_vm5, %v816_v56, %v810_v55 }
 0x851   :  { %v819_v59 = vsel %vm166_vm2, %v818_v58, %v814_v57 }
 0x852   :  { %v821_v60 = vsel %vm820_vm6, %v819_v59, 0.0 }
 0x853   :  { %822 = vst [vmem:[#allocation10] sm:$0xff] %v821_v60 }
 0x854   :  { %1130 = shalt.err (!%p1127_p10)
}
 0x855   :  { %832 = dma.vmem_to_hbm [thread:$0]  %s830_s11, 128, %s1266_s4, [#allocation4]  }
 0x856   :  { %1145 = dma.done.wait [#allocation4], 128  }
 0x857   :  { %1146 = vsyncadd [#allocation4], 4294967168 }
 0x858   :  { %836 = vsyncpa [#allocation3], 1 }
 0x859   :  { %837 = vsyncpa [#allocation6], 1 }
 0x85a   :  { %838 = vsyncpa [#allocation9], 1 }
 0x85b   :  { %839 = vsyncpa [#allocation4], 1 }

</bundles_post_ra>
